<compile_context>
chip_gen: v7x
topology: tpu7x:2x2x1
jax: 0.10.0
libtpu: 0.0.40
codegen_flags: <defaults>
</compile_context>

<pallas_src>
import jax
import jax.numpy as jnp
from jax.experimental import pallas as pl
from jax.experimental.pallas import tpu as pltpu


def _sublane(dtype) -> int:
    """Sublane tile (second-minor dim) for this dtype: 8 f32, 16 bf16, 32 int8."""
    packing = max(1, 4 // jnp.dtype(dtype).itemsize)
    return 8 * packing


def _hbm_copy_cutoff_bytes() -> int:
    """Below this size plain XLA concat wins (launch/step overhead dominates)."""
    try:
        kind = jax.devices()[0].device_kind.lower()
    except Exception:  # pragma: no cover - defensive
        kind = ""
    if "v7" in kind:          # 3.2 TB/s HBM: a 4 MiB concat is ~2.5 us
        return 16 << 20
    return 4 << 20


def _cls_token_pallas(x: jax.Array, token: jax.Array) -> jax.Array:
    """DMA-only concat kernel.

    Requires token.shape[0] % sublane(x.dtype) == 0 and C % 128 == 0 so every
    HBM<->HBM DMA is a clean tile-aligned copy (no retiling path).
    """
    B, N, C = x.shape
    T = token.shape[0]
    itemsize = jnp.dtype(x.dtype).itemsize

    # --- Slab sizing: by bytes, not by a fixed chunk count -------------------
    per_batch_bytes = N * C * itemsize
    TARGET_SLAB_BYTES = 4 << 20          # >= ~4 MiB per x DMA amortizes issue cost
    TOKEN_STAGING_CAP = 8 << 20          # VMEM budget for the broadcast token slab
    bb = max(1, TARGET_SLAB_BYTES // max(per_batch_bytes, 1))
    bb = min(bb, max(1, TOKEN_STAGING_CAP // max(T * C * itemsize, 1)))
    bb = min(bb, B)
    # At least 2 slabs when B >= 2 so v7x can shard the batch over both TCs.
    if B >= 2 and pl.cdiv(B, bb) < 2:
        bb = pl.cdiv(B, 2)
    num_slabs = pl.cdiv(B, bb)
    bb_last = B - (num_slabs - 1) * bb   # 1 <= bb_last <= bb

    def kernel(token_vmem, x_hbm, o_hbm, tok_bcast, sems):
        i = pl.program_id(0)
        b0 = i * bb

        def issue(nb):
            # 1) Big multi-batch strided HBM->HBM copy of x (the bulk of the
            #    bytes) -- started first so it is in flight while we do the
            #    (cheap) token broadcast on the VPU.
            x_cp = pltpu.make_async_copy(
                x_hbm.at[pl.ds(b0, nb)],                    # x[b0:b0+nb, :, :]
                o_hbm.at[pl.ds(b0, nb), pl.ds(T, N), :],    # out[b0:b0+nb, T:T+N, :]
                sems.at[0],
            )
            x_cp.start()

            # 2) Broadcast the (tiny, VMEM-resident) token over the slab's
            #    batch dim and write it with a single VMEM->HBM DMA.
            tok_bcast[...] = jnp.broadcast_to(
                token_vmem[...][None, :, :], tok_bcast.shape
            )
            t_cp = pltpu.make_async_copy(
                tok_bcast.at[pl.ds(0, nb)],                 # (nb, T, C)
                o_hbm.at[pl.ds(b0, nb), pl.ds(0, T), :],    # out[b0:b0+nb, :T, :]
                sems.at[1],
            )
            t_cp.start()

            # Both DMAs of this slab run concurrently; TensorCore does no
            # further vector work.
            x_cp.wait()
            t_cp.wait()

        if bb_last == bb:
            issue(bb)
        else:
            last = num_slabs - 1

            @pl.when(i < last)
            def _():
                issue(bb)

            @pl.when(i == last)
            def _():
                issue(bb_last)

    return pl.pallas_call(
        kernel,
        out_shape=jax.ShapeDtypeStruct((B, T + N, C), x.dtype),
        grid=(num_slabs,),
        in_specs=[
            # Token: full (T, C) block, constant index_map -> fetched into VMEM
            # once and resident across all grid steps (a few KiB).
            pl.BlockSpec((T, C), lambda i: (0, 0)),
            # x stays in HBM; copied with manual multi-batch DMAs.
            pl.BlockSpec(memory_space=pl.ANY),
        ],
        out_specs=pl.BlockSpec(memory_space=pl.ANY),        # written via DMA only
        scratch_shapes=[
            pltpu.VMEM((bb, T, C), x.dtype),                # broadcast token slab
            pltpu.SemaphoreType.DMA((2,)),                  # x DMA, token DMA
        ],
        compiler_params=pltpu.CompilerParams(
            # v7x: shard the slab axis over both TensorCores (overhead halving;
            # HBM bandwidth is shared either way).  No cross-step semaphore
            # handoff is used, so megacore grid partitioning is safe.
            dimension_semantics=("parallel",),
        ),
    )(token, x)


def cls_token_forward(x: jax.Array, token, *, use_pallas=None) -> jax.Array:
    """ClsToken.forward: x (B, N, C), token (T, C) -> (B, T + N, C)."""
    if token is None:          # disabled module: identity
        return x
    B, N, C = x.shape
    T, Ct = token.shape
    assert Ct == C, "token channel dim must match x channel dim"
    # torch.cat requires matching dtypes; cast the learnable token to x's dtype
    # (mirrors PyTorch mixed-precision behaviour).
    token = token.astype(x.dtype)

    # Pallas DMA path needs T sublane-aligned (8 f32 / 16 bf16 / 32 int8) and a
    # lane-multiple C so every DMA is a clean tile copy; otherwise (or for tiny
    # problems) plain XLA concat is already at the HBM roofline.
    aligned = (T % _sublane(x.dtype) == 0) and (C % 128 == 0) and N > 0
    if use_pallas is None:
        big_enough = x.size * jnp.dtype(x.dtype).itemsize >= _hbm_copy_cutoff_bytes()
        use_pallas = aligned and big_enough

    if use_pallas and aligned:
        return _cls_token_pallas(x, token)

    # Fallback: XLA concat (handles misaligned T / ragged C / tiny sizes).
    tok_b = jnp.broadcast_to(token[None, :, :], (B, T, C))
    return jnp.concatenate([tok_b, x], axis=1)


def make_cls_token_params(ndim: int, num_tokens: int = 1, enabled: bool = True,
                          register_multiple: int = 0, key=None,
                          dtype=jnp.float32):
    """Deterministic synthetic init matching the PyTorch __init__ shapes."""
    if not enabled:
        return None
    num_registers = 0
    if register_multiple > 0:
        num_registers = register_multiple - num_tokens % register_multiple
    scale = ndim ** (-0.5)
    if key is None:
        key = jax.random.PRNGKey(0)
    token = jax.random.normal(key, (num_tokens + num_registers, ndim),
                              dtype=jnp.float32) * scale
    return token.astype(dtype)


def _reference(x, token):
    B = x.shape[0]
    tok_b = jnp.broadcast_to(token.astype(x.dtype)[None, :, :],
                             (B, token.shape[0], x.shape[2]))
    return jnp.concatenate([tok_b, x], axis=1)


if __name__ == "__main__":
    key = jax.random.PRNGKey(0)
    k_tok, k_x, k_x2, k_x3 = jax.random.split(key, 4)

    # --- Test 1: small f32 problem, forced Pallas path (even-slab branch) ----
    # batch=2, seq=16, hidden=128; num_tokens=1, register_multiple=8 -> T=8.
    B, N, C = 2, 16, 128
    token = make_cls_token_params(C, num_tokens=1, enabled=True,
                                  register_multiple=8, key=k_tok)
    x = jax.random.normal(k_x, (B, N, C), dtype=jnp.float32)
    out = jax.block_until_ready(cls_token_forward(x, token, use_pallas=True))
    ref = _reference(x, token)
    assert out.shape == ref.shape and out.dtype == ref.dtype
    assert jnp.array_equal(out, ref), "f32 even-slab mismatch vs reference"

    # --- Test 2: odd batch exercises the ragged last-slab branch -------------
    x3 = jax.random.normal(k_x2, (3, N, C), dtype=jnp.float32)
    out3 = jax.block_until_ready(cls_token_forward(x3, token, use_pallas=True))
    assert jnp.array_equal(out3, _reference(x3, token)), "ragged-slab mismatch"

    # --- Test 3: bf16 path (T=16 = bf16 sublane, register_multiple=16) -------
    token_bf = make_cls_token_params(C, num_tokens=1, enabled=True,
                                     register_multiple=16, key=k_tok)
    x_bf = jax.random.normal(k_x3, (B, N, C), dtype=jnp.bfloat16)
    out_bf = jax.block_until_ready(cls_token_forward(x_bf, token_bf,
                                                     use_pallas=True))
    assert jnp.array_equal(out_bf, _reference(x_bf, token_bf)), "bf16 mismatch"

    # --- Test 4: auto-dispatch (tiny problem -> XLA concat) and disabled -----
    out_auto = jax.block_until_ready(cls_token_forward(x, token))
    assert jnp.array_equal(out_auto, ref)
    assert cls_token_forward(x, None) is x   # disabled module: identity

    print("KERNEL_OK")
</pallas_src>

<mosaic_0001>
module attributes {stable_mosaic.version = 11 : i64} {
  func.func @kernel(%arg0: i32, %arg1: memref<8x128xf32, #tpu.memory_space<vmem>>, %arg2: memref<2x16x128xf32, #tpu.memory_space<any>>, %arg3: memref<2x24x128xf32, #tpu.memory_space<any>>, %arg4: memref<1x8x128xf32, #tpu.memory_space<vmem>>, %arg5: memref<2x!tpu.dma_semaphore, #tpu.memory_space<semaphore_mem>>) attributes {dimension_semantics = [#tpu.dimension_semantics<parallel>], iteration_bounds = array<i64: 2>, scalar_prefetch = 0 : i64, scratch_operands = 2 : i64, tpu.core_type = #tpu.core_type<tc>, window_params = [{pipeline_mode = #tpu.pipeline_mode<synchronous>, transform_indices = @transform_0, window_bounds = array<i64: 8, 128>}, {}, {}]} {
    %c1_i32 = arith.constant 1 : i32
    %0 = arith.muli %arg0, %c1_i32 : i32
    %c0_i32 = arith.constant 0 : i32
    %c0_i32_0 = arith.constant 0 : i32
    %c0_i32_1 = arith.constant 0 : i32
    %1 = tpu.memref_slice %arg2[%0, %c0_i32_0, %c0_i32_1] : memref<2x16x128xf32, #tpu.memory_space<any>> -> memref<1x16x128xf32, #tpu.memory_space<any>>
    %c8_i32 = arith.constant 8 : i32
    %c0_i32_2 = arith.constant 0 : i32
    %2 = tpu.memref_slice %arg3[%0, %c8_i32, %c0_i32_2] : memref<2x24x128xf32, #tpu.memory_space<any>> -> memref<1x16x128xf32, #tpu.memory_space<any>>
    %3 = tpu.memref_slice %arg5[%c0_i32] : memref<2x!tpu.dma_semaphore, #tpu.memory_space<semaphore_mem>> -> memref<1x!tpu.dma_semaphore, #tpu.memory_space<semaphore_mem>>
    %4 = tpu.memref_squeeze %3 : memref<1x!tpu.dma_semaphore, #tpu.memory_space<semaphore_mem>> -> memref<!tpu.dma_semaphore, #tpu.memory_space<semaphore_mem>>
    tpu.enqueue_dma source(%1 : memref<1x16x128xf32, #tpu.memory_space<any>>) target(%2 : memref<1x16x128xf32, #tpu.memory_space<any>>) target_semaphore(%4 : memref<!tpu.dma_semaphore, #tpu.memory_space<semaphore_mem>>)
    %c0 = arith.constant 0 : index
    %c0_3 = arith.constant 0 : index
    %5 = vector.load %arg1[%c0, %c0_3] : memref<8x128xf32, #tpu.memory_space<vmem>>, vector<8x128xf32>
    %6 = vector.shape_cast %5 : vector<8x128xf32> to vector<1x8x128xf32>
    %c0_4 = arith.constant 0 : index
    %c0_5 = arith.constant 0 : index
    %c0_6 = arith.constant 0 : index
    %7 = vector.load %arg4[%c0_4, %c0_5, %c0_6] : memref<1x8x128xf32, #tpu.memory_space<vmem>>, vector<1x8x128xf32>
    tpu.vector_store %arg4[%c0_4, %c0_5, %c0_6], %6 {strides = array<i32>} : memref<1x8x128xf32, #tpu.memory_space<vmem>>, vector<1x8x128xf32>,
    %c1_i32_7 = arith.constant 1 : i32
    %c0_i32_8 = arith.constant 0 : i32
    %c0_i32_9 = arith.constant 0 : i32
    %c0_i32_10 = arith.constant 0 : i32
    %8 = tpu.memref_slice %arg4[%c0_i32_8, %c0_i32_9, %c0_i32_10] : memref<1x8x128xf32, #tpu.memory_space<vmem>> -> memref<1x8x128xf32, #tpu.memory_space<vmem>>
    %c0_i32_11 = arith.constant 0 : i32
    %c0_i32_12 = arith.constant 0 : i32
    %9 = tpu.memref_slice %arg3[%0, %c0_i32_11, %c0_i32_12] : memref<2x24x128xf32, #tpu.memory_space<any>> -> memref<1x8x128xf32, #tpu.memory_space<any>>
    %10 = tpu.memref_slice %arg5[%c1_i32_7] : memref<2x!tpu.dma_semaphore, #tpu.memory_space<semaphore_mem>> -> memref<1x!tpu.dma_semaphore, #tpu.memory_space<semaphore_mem>>
    %11 = tpu.memref_squeeze %10 : memref<1x!tpu.dma_semaphore, #tpu.memory_space<semaphore_mem>> -> memref<!tpu.dma_semaphore, #tpu.memory_space<semaphore_mem>>
    tpu.enqueue_dma source(%8 : memref<1x8x128xf32, #tpu.memory_space<vmem>>) target(%9 : memref<1x8x128xf32, #tpu.memory_space<any>>) target_semaphore(%11 : memref<!tpu.dma_semaphore, #tpu.memory_space<semaphore_mem>>)
    %c0_i32_13 = arith.constant 0 : i32
    %c0_i32_14 = arith.constant 0 : i32
    %c0_i32_15 = arith.constant 0 : i32
    %12 = tpu.memref_slice %arg2[%0, %c0_i32_14, %c0_i32_15] : memref<2x16x128xf32, #tpu.memory_space<any>> -> memref<1x16x128xf32, #tpu.memory_space<any>>
    %c8_i32_16 = arith.constant 8 : i32
    %c0_i32_17 = arith.constant 0 : i32
    %13 = tpu.memref_slice %arg3[%0, %c8_i32_16, %c0_i32_17] : memref<2x24x128xf32, #tpu.memory_space<any>> -> memref<1x16x128xf32, #tpu.memory_space<any>>
    %14 = tpu.memref_slice %arg5[%c0_i32_13] : memref<2x!tpu.dma_semaphore, #tpu.memory_space<semaphore_mem>> -> memref<1x!tpu.dma_semaphore, #tpu.memory_space<semaphore_mem>>
    %15 = tpu.memref_squeeze %14 : memref<1x!tpu.dma_semaphore, #tpu.memory_space<semaphore_mem>> -> memref<!tpu.dma_semaphore, #tpu.memory_space<semaphore_mem>>
    tpu.wait_dma2 semaphore(%15 : memref<!tpu.dma_semaphore, #tpu.memory_space<semaphore_mem>>) src(%12 : memref<1x16x128xf32, #tpu.memory_space<any>>) dst(%13 : memref<1x16x128xf32, #tpu.memory_space<any>>)
    %c1_i32_18 = arith.constant 1 : i32
    %c0_i32_19 = arith.constant 0 : i32
    %c0_i32_20 = arith.constant 0 : i32
    %c0_i32_21 = arith.constant 0 : i32
    %16 = tpu.memref_slice %arg4[%c0_i32_19, %c0_i32_20, %c0_i32_21] : memref<1x8x128xf32, #tpu.memory_space<vmem>> -> memref<1x8x128xf32, #tpu.memory_space<vmem>>
    %c0_i32_22 = arith.constant 0 : i32
    %c0_i32_23 = arith.constant 0 : i32
    %17 = tpu.memref_slice %arg3[%0, %c0_i32_22, %c0_i32_23] : memref<2x24x128xf32, #tpu.memory_space<any>> -> memref<1x8x128xf32, #tpu.memory_space<any>>
    %18 = tpu.memref_slice %arg5[%c1_i32_18] : memref<2x!tpu.dma_semaphore, #tpu.memory_space<semaphore_mem>> -> memref<1x!tpu.dma_semaphore, #tpu.memory_space<semaphore_mem>>
    %19 = tpu.memref_squeeze %18 : memref<1x!tpu.dma_semaphore, #tpu.memory_space<semaphore_mem>> -> memref<!tpu.dma_semaphore, #tpu.memory_space<semaphore_mem>>
    tpu.wait_dma2 semaphore(%19 : memref<!tpu.dma_semaphore, #tpu.memory_space<semaphore_mem>>) src(%16 : memref<1x8x128xf32, #tpu.memory_space<vmem>>) dst(%17 : memref<1x8x128xf32, #tpu.memory_space<any>>)
    return
  }
  func.func @transform_0(%arg0: i32) -> (i32, i32) {
    %c0_i32 = arith.constant 0 : i32
    %c0_i32_0 = arith.constant 0 : i32
    %c0_i32_1 = arith.constant 0 : i32
    return %c0_i32, %c0_i32_0 : i32, i32
  }
}

</mosaic_0001>

<bundles_post_ra>
// kernel: tpu_custom_call.1
= control target key start
LH: loop header
LB: loop body
LE: loop exit
PB: predicated region body
PF: predicated region fallthrough
CT: control target
= control target key end

     0   :  { %7 = vsyncpa [#allocation5], 0  ;;  %s270_s9 = smov 0   ;;  %s326_s0 = inlined_call_operand.hbm [shape: f32[8,128], index: 0, kind: input, shape index: {}]   ;;  %s327_s1 = inlined_call_operand.hbm [shape: f32[2,16,128], index: 1, kind: input, shape index: {}]   ;;  %s328_s2 = inlined_call_operand.hbm [shape: f32[2,24,128], index: 2, kind: output, shape index: {}]  }
   0x1 LB: > { %s250_s10 = smov [#allocation4]   ;;  %s276_s12 = sadd.s32 4294967295, %s248_s9   ;;  %s248_s9 = sphi %s270_s9, %s13_s9  }
   0x2   : > { %s42_s11 = sshll.u32 %s250_s10, 4  ;;  %p166_p1 = scmp.ge.s32.totalorder %s248_s9, 1  ;;  %s43_s11 = int_to_ptr.vmem [resolvable:$true] %s42_s11 }
   0x3   : > { %p329_p2 = scmp.eq.s32.totalorder %s276_s12, 0  ;;  %s182_s16 = scalar_lea.hbm %s326_s0, 128 }
   0x4   : > { %p183_p4 = scmp.ne.s32.totalorder %s326_s0, %s182_s16  ;;  %p189_p8 = scmp.lt.u32.totalorder %s182_s16, %s326_s0 }
   0x5   : > { %p283_p3 = pnand %p329_p2, %p166_p1 }
   0x7   : > { %p184_p5 = pneg %p283_p3 }
   0x9   : > { %p185_p6 = pnand %p184_p5, %p183_p4 }
   0xb   : > { %p186_p7 = pneg %p185_p6 }
   0xd   : > { %p191_p9 = pnand %p189_p8, %p186_p7 }
   0xf   : > { %194 = shalt.err (!%p191_p9)
}
  0x10   : > { %s195_s21 = scalar_lea.vmem %s43_s11, 128  ;;  %p203_p13 = scmp.lt.s32.totalorder %s43_s11, %s43_s11 }
  0x11   : > { %p196_p10 = scmp.ne.s32.totalorder %s43_s11, %s195_s21  ;;  %p204_p1 = scmp.lt.s32.totalorder %s195_s21, %s195_s21 }
  0x13   : > { %p198_p11 = pnand %p196_p10, %p184_p5  ;;  %p205_p2 = por %p204_p1, %p203_p13 }
  0x15   : > { %p199_p12 = pneg %p198_p11 }
  0x17   : > { %p206_p0 = pnand %p205_p2, %p199_p12 }
  0x19   : > { %209 = shalt.err (!%p206_p0)
}
  0x1a   : > { %165 = dma.hbm_to_vmem [thread:$0]  (!%p283_p3), %s326_s0, 128, %s43_s11, [#allocation5]  }
  0x1b   : > { %p331_p4 = scmp.lt.s32.totalorder %s248_s9, 1 }
  0x1c   : > { %p332_p6 = scmp.eq.s32.totalorder (!%p331_p4), %s276_s12, 0 }
  0x1d   : > { %53 = sbr.rel (%p331_p4) target bundleno = 67 (0x43), region = 24 }
  0x24   : > { %239 = dma.done.wait (%p332_p6), [#allocation5], 128   ;;  %p333_p5 = pmov %p332_p6 }
  0x25   : > { %s156_s24 = sshll.u32 %s276_s12, 8  ;;  %s152_s25 = smul.u32 384, %s276_s12 }
  0x26   : > { %241 = vsyncadd (%p333_p5), [#allocation5], 4294967168  ;;  %s63_s28 = scalar_lea.hbm %s327_s1, %s156_s24  ;;  %s251_s5 = smov [#allocation3]  }
  0x27   : > { %s125_s3 = scalar_lea.hbm %s328_s2, %s152_s25  ;;  %s252_s6 = smov [#allocation6]  }
  0x28   : > { %s126_s4 = scalar_lea.hbm %s125_s3, 128  ;;  %s253_s7 = smov 0  }
  0x29   : > { %80 = dma.general %s63_s28, 256, %s126_s4, %s251_s5, %s252_s6, [#allocation7], %s253_s7, 0  }
  0x2a   : > { %s254_s8 = smov [#allocation2]   ;;  %v81_v0 = vld [vmem:[#allocation4] sm:$0xff] }
  0x2b   : > { %s93_s10 = sshll.u32 %s254_s8, 4  ;;  %82 = vst [vmem:[#allocation2] sm:$0xff] %v81_v0  ;;  %s94_s10 = int_to_ptr.vmem [resolvable:$true] %s93_s10 }
  0x2c   : > { %s210_s11 = scalar_lea.vmem %s94_s10, 128  ;;  %p215_p2 = scmp.lt.s32.totalorder %s94_s10, %s94_s10 }
  0x2d   : > { %p211_p0 = scmp.ne.s32.totalorder %s94_s10, %s210_s11  ;;  %p216_p3 = scmp.lt.s32.totalorder %s210_s11, %s210_s11 }
  0x2f   : > { %p217_p7 = por %p216_p3, %p215_p2 }
  0x31   : > { %p218_p8 = pnand %p217_p7, %p211_p0 }
  0x33   : > { %221 = shalt.err (!%p218_p8)  }
  0x34   : > { %p223_p9 = scmp.ne.s32.totalorder %s125_s3, %s126_s4  ;;  %s224_s14 = scalar_lea.hbm %s328_s2, 768 }
  0x35   : > { %p225_p10 = scmp.lt.u32.totalorder %s125_s3, %s328_s2  ;;  %p226_p11 = scmp.lt.u32.totalorder %s224_s14, %s126_s4 }
  0x36   : > { %p228_p13 = scmp.lt.u32.totalorder %s126_s4, %s125_s3 }
  0x37   : > { %p227_p12 = por %p226_p11, %p225_p10 }
  0x39   : > { %p229_p1 = por %p228_p13, %p227_p12 }
  0x3b   : > { %p230_p4 = pnand %p229_p1, %p223_p9 }
  0x3d   : > { %233 = shalt.err (!%p230_p4)  }
  0x3e   : > { %96 = dma.vmem_to_hbm [thread:$0]  %s94_s10, 128, %s125_s3, [#allocation3 + $0x1] }
  0x3f   : > { %242 = dma.done.wait [#allocation3], 256 }
  0x40   : > { %243 = vsyncadd [#allocation3], 4294967040 }
  0x41   : > { %244 = dma.done.wait [#allocation3 + $0x1], 128 }
  0x42   : > { %245 = vsyncadd [#allocation3 + $0x1], 4294967168 }
  0x43 PF: > { %s13_s9 = sadd.s32 1, %s248_s9  }
  0x44   : > { %p10_p6 = scmp.ge.s32.totalorder %s13_s9, 3  }
  0x46   :  { %12 = sbr.rel (!%p10_p6) target bundleno = 1 (0x1), region = 49 }
  0x4d   :  { %105 = vsyncpa [#allocation5], 1 }
  0x4e   :  { %107 = vsyncpa [#allocation5 + $0x1], 1 }
  0x4f   :  { %108 = vsyncmov [#allocation3] }
  0x52   :  { %s109_s17 = vpop.sfrf %108 }
  0x53   :  { %p154_p5 = scmp.ne.s32.totalorder %s109_s17, 0 }
  0x55   :  { %113 = shalt.err (%p154_p5)  }
  0x56   :  { %115 = vsyncmov [#allocation3 + $0x1] }
  0x59   :  { %s116_s18 = vpop.sfrf %115 }
  0x5a   :  { %p155_p0 = scmp.ne.s32.totalorder %s116_s18, 0 }
  0x5c   :  { %120 = shalt.err (%p155_p0)  }

</bundles_post_ra>
